<compile_context>
chip_gen: v7x
topology: tpu7x:2x2x1
jax: 0.10.0
libtpu: 0.0.40
codegen_flags: <defaults>
</compile_context>

<pallas_src>
import functools

import jax
import jax.numpy as jnp
from jax import lax
from jax.experimental import pallas as pl
from jax.experimental.pallas import tpu as pltpu


def _lstm_net_kernel(x_ref, wih_ref, whh_ref, b_ref, wl_ref, bl_ref,
                     out_ref, h_scr):
    """LSTM recurrence + final Linear, entirely in-kernel.

    x_ref:   (S, D)       input sequence (batch squeezed)
    wih_ref: (D, 4H)      W_ih^T
    whh_ref: (H, 4H)      W_hh^T
    b_ref:   (1, 4H)      b_ih + b_hh
    wl_ref:  (H, Opad)    linear weight^T, zero-padded to a multiple of 128 lanes
    bl_ref:  (1, Opad)    linear bias, zero-padded
    out_ref: (R, Opad)    output, R = round_up(S-1, 8); wrapper slices rows/lanes
    h_scr:   (R, H)       VMEM scratch holding per-step hidden states
    """
    H = whh_ref.shape[0]
    G = 4 * H
    S = x_ref.shape[0]
    n_steps = S - 1                 # the module drops the last timestep

    # Hoist every operand into vregs once; nothing round-trips through VMEM
    # after this point except the cheap per-step h_scr row store.
    x = x_ref[...]
    wih = wih_ref[...]
    whh = whh_ref[...]
    b = b_ref[...]
    wl = wl_ref[...]
    bl = bl_ref[...]

    # Per-lane constants for the sigmoid-via-tanh trick, built once.
    # (Correct for any H; lane-layout is only optimal when 4H % 128 == 0.)
    lane = lax.broadcasted_iota(jnp.int32, (1, G), 1)
    is_g_lane = (lane >= 2 * H) & (lane < 3 * H)
    scale = jnp.where(is_g_lane, 1.0, 0.5).astype(jnp.float32)   # pre & post mul
    shift = jnp.where(is_g_lane, 0.0, 0.5).astype(jnp.float32)   # post add

    # Hot path #1: input projection for all timesteps in one MXU matmul.  The
    # tanh-trick pre-scale of the sigmoid lanes is folded into gx and into
    # W_hh's columns here (hoisted), so the loop body never pre-scales.
    gx = (jnp.dot(x, wih, preferred_element_type=jnp.float32) + b) * scale  # (S,4H)
    whh_s = whh * scale                                                     # (H,4H)

    # Zero the scratch so padded rows contribute zeros to the final matmul.
    h_scr[...] = jnp.zeros(h_scr.shape, h_scr.dtype)

    h = jnp.zeros((1, H), jnp.float32)
    c = jnp.zeros((1, H), jnp.float32)
    # Statically unrolled recurrence: static slices into gx, h/c stay in vregs,
    # W_hh stays loaded across all steps.  h_{S-1} never feeds the output, so
    # only S-1 steps run.
    for t in range(n_steps):
        g_pre = gx[t:t + 1, :] + jnp.dot(
            h, whh_s, preferred_element_type=jnp.float32)        # (1, 4H), pre-scaled
        # ONE full-width EUP tanh; per-lane affine fixup turns the i/f/o lanes
        # into sigmoid(raw) and leaves the g lanes as tanh(raw).
        act = jnp.tanh(g_pre) * scale + shift
        i_g = act[:, 0 * H:1 * H]
        f_g = act[:, 1 * H:2 * H]
        g_g = act[:, 2 * H:3 * H]
        o_g = act[:, 3 * H:4 * H]
        c = f_g * c + i_g * g_g
        h = o_g * jnp.tanh(c)
        # Single-row store, off the recurrence critical path.
        h_scr[pl.ds(t, 1), :] = h

    # Hot path #2: output projection in one MXU matmul.  h_scr is (8k, H) and
    # Opad is a multiple of 128, so this store is fully sublane/lane dense.
    h_all = h_scr[...]
    out_ref[...] = jnp.dot(h_all, wl, preferred_element_type=jnp.float32) + bl


def prepare_lstm_net_params(w_ih, w_hh, b_ih, b_hh, w_l, b_l):
    """One-time weight preprocessing (hoisted out of the per-call hot path)."""
    H = w_hh.shape[1]
    O = w_l.shape[0]
    O_pad = ((O + 127) // 128) * 128           # lane-dense output width
    wih_t = jnp.asarray(w_ih, jnp.float32).T                   # (D, 4H)
    whh_t = jnp.asarray(w_hh, jnp.float32).T                   # (H, 4H)
    b = (jnp.asarray(b_ih, jnp.float32)
         + jnp.asarray(b_hh, jnp.float32)).reshape(1, 4 * H)   # (1, 4H)
    wl_pad = jnp.zeros((H, O_pad), jnp.float32).at[:, :O].set(
        jnp.asarray(w_l, jnp.float32).T)                       # (H, Opad)
    bl_pad = jnp.zeros((1, O_pad), jnp.float32).at[:, :O].set(
        jnp.asarray(b_l, jnp.float32).reshape(1, O))           # (1, Opad)
    return {"wih_t": wih_t, "whh_t": whh_t, "b": b,
            "wl_pad": wl_pad, "bl_pad": bl_pad, "out_dim": O}


@functools.partial(jax.jit, static_argnames=("out_dim",))
def _lstm_net_forward_prepared(x, wih_t, whh_t, b, wl_pad, bl_pad, *, out_dim):
    """x: (S, 1, D) float32.  Returns (S-1, out_dim), matching the module."""
    S, B, D = x.shape
    assert B == 1, "forward() only type-checks for batch == 1"
    assert S >= 2, "module output is empty for S < 2"
    H = whh_t.shape[0]
    O_pad = wl_pad.shape[1]
    R = ((S - 1 + 7) // 8) * 8                 # sublane-padded output rows

    x2 = x.reshape(S, D).astype(jnp.float32)

    out = pl.pallas_call(
        _lstm_net_kernel,
        out_shape=jax.ShapeDtypeStruct((R, O_pad), jnp.float32),
        in_specs=[pl.BlockSpec(memory_space=pltpu.MemorySpace.VMEM)] * 6,
        out_specs=pl.BlockSpec(memory_space=pltpu.MemorySpace.VMEM),
        scratch_shapes=[pltpu.VMEM((R, H), jnp.float32)],
    )(x2, wih_t, whh_t, b, wl_pad, bl_pad)

    # The module returns `self.l(lstm_out.view(S, -1))[0:-1]`; drop the
    # sublane/lane padding the kernel added for dense stores.
    return out[:S - 1, :out_dim]


def lstm_net_forward(x, w_ih, w_hh, b_ih, b_hh, w_l, b_l):
    """Convenience wrapper: prepare (one-time cost) + run."""
    p = prepare_lstm_net_params(w_ih, w_hh, b_ih, b_hh, w_l, b_l)
    return _lstm_net_forward_prepared(
        x, p["wih_t"], p["whh_t"], p["b"], p["wl_pad"], p["bl_pad"],
        out_dim=p["out_dim"])


def _reference(x, w_ih, w_hh, b_ih, b_hh, w_l, b_l):
    """Pure-JAX reference of the PyTorch forward, for correctness checking."""
    S, B, D = x.shape
    H = w_hh.shape[1]
    x2 = x.reshape(S, D)
    b = b_ih + b_hh

    def step(carry, xt):
        h, c = carry
        gates = xt @ w_ih.T + h @ w_hh.T + b
        i, f, g, o = jnp.split(gates, 4)
        i = jax.nn.sigmoid(i)
        f = jax.nn.sigmoid(f)
        g = jnp.tanh(g)
        o = jax.nn.sigmoid(o)
        c = f * c + i * g
        h = o * jnp.tanh(c)
        return (h, c), h

    (_, _), hs = lax.scan(step, (jnp.zeros(H), jnp.zeros(H)), x2)
    out = hs @ w_l.T + b_l
    return out[0:-1]


if __name__ == "__main__":
    # Small shapes consistent with the module: seq=8, batch=1 (required by the
    # forward's view+Linear), in_dim=16, hidden_dim=32, out_dim=8.
    S, B, D, H, O = 8, 1, 16, 32, 8

    key = jax.random.PRNGKey(0)
    ks = jax.random.split(key, 8)
    bound = 1.0 / (H ** 0.5)  # PyTorch-style uniform init bound

    x = jax.random.normal(ks[0], (S, B, D), jnp.float32)
    w_ih = jax.random.uniform(ks[1], (4 * H, D), jnp.float32, -bound, bound)
    w_hh = jax.random.uniform(ks[2], (4 * H, H), jnp.float32, -bound, bound)
    b_ih = jax.random.uniform(ks[3], (4 * H,), jnp.float32, -bound, bound)
    b_hh = jax.random.uniform(ks[4], (4 * H,), jnp.float32, -bound, bound)
    w_l = jax.random.uniform(ks[5], (O, H), jnp.float32, -bound, bound)
    b_l = jax.random.uniform(ks[6], (O,), jnp.float32, -bound, bound)

    # One-time weight preprocessing, then the hot-path call.
    params = prepare_lstm_net_params(w_ih, w_hh, b_ih, b_hh, w_l, b_l)
    out = _lstm_net_forward_prepared(
        x, params["wih_t"], params["whh_t"], params["b"],
        params["wl_pad"], params["bl_pad"], out_dim=params["out_dim"])
    out = jax.block_until_ready(out)

    ref = _reference(x, w_ih, w_hh, b_ih, b_hh, w_l, b_l)
    assert out.shape == (S - 1, O), out.shape
    # atol slightly relaxed vs 1e-5: sigmoid-via-tanh reorders rounding (exact
    # in infinite precision); real bugs (gate order, dropped row) are >> 1e-3.
    assert jnp.allclose(out, ref, atol=5e-5, rtol=1e-5), (
        float(jnp.max(jnp.abs(out - ref))))

    print("KERNEL_OK")
</pallas_src>

<mosaic_0001>
module attributes {stable_mosaic.version = 11 : i64} {
  func.func @_lstm_net_kernel(%arg0: memref<8x16xf32, #tpu.memory_space<vmem>>, %arg1: memref<16x128xf32, #tpu.memory_space<vmem>>, %arg2: memref<32x128xf32, #tpu.memory_space<vmem>>, %arg3: memref<1x128xf32, #tpu.memory_space<vmem>>, %arg4: memref<32x128xf32, #tpu.memory_space<vmem>>, %arg5: memref<1x128xf32, #tpu.memory_space<vmem>>, %arg6: memref<8x128xf32, #tpu.memory_space<vmem>>, %arg7: memref<8x32xf32, #tpu.memory_space<vmem>>) attributes {dimension_semantics = [], scalar_prefetch = 0 : i64, scratch_operands = 1 : i64, tpu.core_type = #tpu.core_type<tc>} {
    %c0 = arith.constant 0 : index
    %c0_0 = arith.constant 0 : index
    %0 = vector.load %arg0[%c0, %c0_0] : memref<8x16xf32, #tpu.memory_space<vmem>>, vector<8x16xf32>
    %c0_1 = arith.constant 0 : index
    %c0_2 = arith.constant 0 : index
    %1 = vector.load %arg1[%c0_1, %c0_2] : memref<16x128xf32, #tpu.memory_space<vmem>>, vector<16x128xf32>
    %c0_3 = arith.constant 0 : index
    %c0_4 = arith.constant 0 : index
    %2 = vector.load %arg2[%c0_3, %c0_4] : memref<32x128xf32, #tpu.memory_space<vmem>>, vector<32x128xf32>
    %c0_5 = arith.constant 0 : index
    %c0_6 = arith.constant 0 : index
    %3 = vector.load %arg3[%c0_5, %c0_6] : memref<1x128xf32, #tpu.memory_space<vmem>>, vector<1x128xf32>
    %c0_7 = arith.constant 0 : index
    %c0_8 = arith.constant 0 : index
    %4 = vector.load %arg4[%c0_7, %c0_8] : memref<32x128xf32, #tpu.memory_space<vmem>>, vector<32x128xf32>
    %c0_9 = arith.constant 0 : index
    %c0_10 = arith.constant 0 : index
    %5 = vector.load %arg5[%c0_9, %c0_10] : memref<1x128xf32, #tpu.memory_space<vmem>>, vector<1x128xf32>
    %6 = tpu.iota {dimensions = array<i32: 1>} : vector<1x128xi32>
    %c64_i32 = arith.constant 64 : i32
    %7 = vector.broadcast %c64_i32 : i32 to vector<1x128xi32>
    %8 = arith.cmpi sge, %6, %7 : vector<1x128xi32>
    %c96_i32 = arith.constant 96 : i32
    %9 = vector.broadcast %c96_i32 : i32 to vector<1x128xi32>
    %10 = arith.cmpi slt, %6, %9 : vector<1x128xi32>
    %11 = arith.andi %8, %10 : vector<1x128xi1>
    %cst = arith.constant 1.000000e+00 : f32
    %cst_11 = arith.constant 5.000000e-01 : f32
    %12 = vector.broadcast %cst : f32 to vector<1x128xf32>
    %13 = vector.broadcast %cst_11 : f32 to vector<1x128xf32>
    %14 = arith.select %11, %12, %13 : vector<1x128xi1>, vector<1x128xf32>
    %cst_12 = arith.constant 0.000000e+00 : f32
    %cst_13 = arith.constant 5.000000e-01 : f32
    %15 = vector.broadcast %cst_12 : f32 to vector<1x128xf32>
    %16 = vector.broadcast %cst_13 : f32 to vector<1x128xf32>
    %17 = arith.select %11, %15, %16 : vector<1x128xi1>, vector<1x128xf32>
    %cst_14 = arith.constant dense<0.000000e+00> : vector<8x128xf32>
    %18 = tpu.matmul %0, %1, %cst_14 {dimension_numbers = #tpu.dot_dimension_numbers<[1], [0], [0], [1], [0, 0, 1, 1], [], []>} : vector<8x16xf32>, vector<16x128xf32>, vector<8x128xf32> -> vector<8x128xf32>
    %19 = vector.broadcast %3 : vector<1x128xf32> to vector<8x128xf32>
    %20 = arith.addf %18, %19 : vector<8x128xf32>
    %21 = vector.broadcast %14 : vector<1x128xf32> to vector<8x128xf32>
    %22 = arith.mulf %20, %21 : vector<8x128xf32>
    %23 = vector.broadcast %14 : vector<1x128xf32> to vector<32x128xf32>
    %24 = arith.mulf %2, %23 : vector<32x128xf32>
    %cst_15 = arith.constant 0.000000e+00 : f32
    %25 = vector.broadcast %cst_15 : f32 to vector<8x32xf32>
    %c0_16 = arith.constant 0 : index
    %c0_17 = arith.constant 0 : index
    %26 = vector.load %arg7[%c0_16, %c0_17] : memref<8x32xf32, #tpu.memory_space<vmem>>, vector<8x32xf32>
    tpu.vector_store %arg7[%c0_16, %c0_17], %25 {strides = array<i32>} : memref<8x32xf32, #tpu.memory_space<vmem>>, vector<8x32xf32>,
    %cst_18 = arith.constant 0.000000e+00 : f32
    %27 = vector.broadcast %cst_18 : f32 to vector<1x32xf32>
    %cst_19 = arith.constant 0.000000e+00 : f32
    %28 = vector.broadcast %cst_19 : f32 to vector<1x32xf32>
    %29 = vector.extract_strided_slice %22 {offsets = [0, 0], sizes = [1, 128], strides = [1, 1]} : vector<8x128xf32> to vector<1x128xf32>
    %cst_20 = arith.constant dense<0.000000e+00> : vector<1x128xf32>
    %30 = tpu.matmul %27, %24, %cst_20 {dimension_numbers = #tpu.dot_dimension_numbers<[1], [0], [0], [1], [0, 0, 1, 1], [], []>} : vector<1x32xf32>, vector<32x128xf32>, vector<1x128xf32> -> vector<1x128xf32>
    %31 = arith.addf %29, %30 : vector<1x128xf32>
    %32 = math.tanh %31 : vector<1x128xf32>
    %33 = arith.mulf %32, %14 : vector<1x128xf32>
    %34 = arith.addf %33, %17 : vector<1x128xf32>
    %35 = vector.extract_strided_slice %34 {offsets = [0, 0], sizes = [1, 32], strides = [1, 1]} : vector<1x128xf32> to vector<1x32xf32>
    %36 = vector.extract_strided_slice %34 {offsets = [0, 32], sizes = [1, 32], strides = [1, 1]} : vector<1x128xf32> to vector<1x32xf32>
    %37 = vector.extract_strided_slice %34 {offsets = [0, 64], sizes = [1, 32], strides = [1, 1]} : vector<1x128xf32> to vector<1x32xf32>
    %38 = vector.extract_strided_slice %34 {offsets = [0, 96], sizes = [1, 32], strides = [1, 1]} : vector<1x128xf32> to vector<1x32xf32>
    %39 = arith.mulf %36, %28 : vector<1x32xf32>
    %40 = arith.mulf %35, %37 : vector<1x32xf32>
    %41 = arith.addf %39, %40 : vector<1x32xf32>
    %42 = math.tanh %41 : vector<1x32xf32>
    %43 = arith.mulf %38, %42 : vector<1x32xf32>
    %c0_21 = arith.constant 0 : index
    %c0_22 = arith.constant 0 : index
    %44 = vector.load %arg7[%c0_21, %c0_22] : memref<8x32xf32, #tpu.memory_space<vmem>>, vector<1x32xf32>
    tpu.vector_store %arg7[%c0_21, %c0_22], %43 {strides = array<i32>} : memref<8x32xf32, #tpu.memory_space<vmem>>, vector<1x32xf32>,
    %45 = vector.extract_strided_slice %22 {offsets = [1, 0], sizes = [1, 128], strides = [1, 1]} : vector<8x128xf32> to vector<1x128xf32>
    %cst_23 = arith.constant dense<0.000000e+00> : vector<1x128xf32>
    %46 = tpu.matmul %43, %24, %cst_23 {dimension_numbers = #tpu.dot_dimension_numbers<[1], [0], [0], [1], [0, 0, 1, 1], [], []>} : vector<1x32xf32>, vector<32x128xf32>, vector<1x128xf32> -> vector<1x128xf32>
    %47 = arith.addf %45, %46 : vector<1x128xf32>
    %48 = math.tanh %47 : vector<1x128xf32>
    %49 = arith.mulf %48, %14 : vector<1x128xf32>
    %50 = arith.addf %49, %17 : vector<1x128xf32>
    %51 = vector.extract_strided_slice %50 {offsets = [0, 0], sizes = [1, 32], strides = [1, 1]} : vector<1x128xf32> to vector<1x32xf32>
    %52 = vector.extract_strided_slice %50 {offsets = [0, 32], sizes = [1, 32], strides = [1, 1]} : vector<1x128xf32> to vector<1x32xf32>
    %53 = vector.extract_strided_slice %50 {offsets = [0, 64], sizes = [1, 32], strides = [1, 1]} : vector<1x128xf32> to vector<1x32xf32>
    %54 = vector.extract_strided_slice %50 {offsets = [0, 96], sizes = [1, 32], strides = [1, 1]} : vector<1x128xf32> to vector<1x32xf32>
    %55 = arith.mulf %52, %41 : vector<1x32xf32>
    %56 = arith.mulf %51, %53 : vector<1x32xf32>
    %57 = arith.addf %55, %56 : vector<1x32xf32>
    %58 = math.tanh %57 : vector<1x32xf32>
    %59 = arith.mulf %54, %58 : vector<1x32xf32>
    %c1 = arith.constant 1 : index
    %c0_24 = arith.constant 0 : index
    %60 = vector.load %arg7[%c1, %c0_24] : memref<8x32xf32, #tpu.memory_space<vmem>>, vector<1x32xf32>
    tpu.vector_store %arg7[%c1, %c0_24], %59 {strides = array<i32>} : memref<8x32xf32, #tpu.memory_space<vmem>>, vector<1x32xf32>,
    %61 = vector.extract_strided_slice %22 {offsets = [2, 0], sizes = [1, 128], strides = [1, 1]} : vector<8x128xf32> to vector<1x128xf32>
    %cst_25 = arith.constant dense<0.000000e+00> : vector<1x128xf32>
    %62 = tpu.matmul %59, %24, %cst_25 {dimension_numbers = #tpu.dot_dimension_numbers<[1], [0], [0], [1], [0, 0, 1, 1], [], []>} : vector<1x32xf32>, vector<32x128xf32>, vector<1x128xf32> -> vector<1x128xf32>
    %63 = arith.addf %61, %62 : vector<1x128xf32>
    %64 = math.tanh %63 : vector<1x128xf32>
    %65 = arith.mulf %64, %14 : vector<1x128xf32>
    %66 = arith.addf %65, %17 : vector<1x128xf32>
    %67 = vector.extract_strided_slice %66 {offsets = [0, 0], sizes = [1, 32], strides = [1, 1]} : vector<1x128xf32> to vector<1x32xf32>
    %68 = vector.extract_strided_slice %66 {offsets = [0, 32], sizes = [1, 32], strides = [1, 1]} : vector<1x128xf32> to vector<1x32xf32>
    %69 = vector.extract_strided_slice %66 {offsets = [0, 64], sizes = [1, 32], strides = [1, 1]} : vector<1x128xf32> to vector<1x32xf32>
    %70 = vector.extract_strided_slice %66 {offsets = [0, 96], sizes = [1, 32], strides = [1, 1]} : vector<1x128xf32> to vector<1x32xf32>
    %71 = arith.mulf %68, %57 : vector<1x32xf32>
    %72 = arith.mulf %67, %69 : vector<1x32xf32>
    %73 = arith.addf %71, %72 : vector<1x32xf32>
    %74 = math.tanh %73 : vector<1x32xf32>
    %75 = arith.mulf %70, %74 : vector<1x32xf32>
    %c2 = arith.constant 2 : index
    %c0_26 = arith.constant 0 : index
    %76 = vector.load %arg7[%c2, %c0_26] : memref<8x32xf32, #tpu.memory_space<vmem>>, vector<1x32xf32>
    tpu.vector_store %arg7[%c2, %c0_26], %75 {strides = array<i32>} : memref<8x32xf32, #tpu.memory_space<vmem>>, vector<1x32xf32>,
    %77 = vector.extract_strided_slice %22 {offsets = [3, 0], sizes = [1, 128], strides = [1, 1]} : vector<8x128xf32> to vector<1x128xf32>
    %cst_27 = arith.constant dense<0.000000e+00> : vector<1x128xf32>
    %78 = tpu.matmul %75, %24, %cst_27 {dimension_numbers = #tpu.dot_dimension_numbers<[1], [0], [0], [1], [0, 0, 1, 1], [], []>} : vector<1x32xf32>, vector<32x128xf32>, vector<1x128xf32> -> vector<1x128xf32>
    %79 = arith.addf %77, %78 : vector<1x128xf32>
    %80 = math.tanh %79 : vector<1x128xf32>
    %81 = arith.mulf %80, %14 : vector<1x128xf32>
    %82 = arith.addf %81, %17 : vector<1x128xf32>
    %83 = vector.extract_strided_slice %82 {offsets = [0, 0], sizes = [1, 32], strides = [1, 1]} : vector<1x128xf32> to vector<1x32xf32>
    %84 = vector.extract_strided_slice %82 {offsets = [0, 32], sizes = [1, 32], strides = [1, 1]} : vector<1x128xf32> to vector<1x32xf32>
    %85 = vector.extract_strided_slice %82 {offsets = [0, 64], sizes = [1, 32], strides = [1, 1]} : vector<1x128xf32> to vector<1x32xf32>
    %86 = vector.extract_strided_slice %82 {offsets = [0, 96], sizes = [1, 32], strides = [1, 1]} : vector<1x128xf32> to vector<1x32xf32>
    %87 = arith.mulf %84, %73 : vector<1x32xf32>
    %88 = arith.mulf %83, %85 : vector<1x32xf32>
    %89 = arith.addf %87, %88 : vector<1x32xf32>
    %90 = math.tanh %89 : vector<1x32xf32>
    %91 = arith.mulf %86, %90 : vector<1x32xf32>
    %c3 = arith.constant 3 : index
    %c0_28 = arith.constant 0 : index
    %92 = vector.load %arg7[%c3, %c0_28] : memref<8x32xf32, #tpu.memory_space<vmem>>, vector<1x32xf32>
    tpu.vector_store %arg7[%c3, %c0_28], %91 {strides = array<i32>} : memref<8x32xf32, #tpu.memory_space<vmem>>, vector<1x32xf32>,
    %93 = vector.extract_strided_slice %22 {offsets = [4, 0], sizes = [1, 128], strides = [1, 1]} : vector<8x128xf32> to vector<1x128xf32>
    %cst_29 = arith.constant dense<0.000000e+00> : vector<1x128xf32>
    %94 = tpu.matmul %91, %24, %cst_29 {dimension_numbers = #tpu.dot_dimension_numbers<[1], [0], [0], [1], [0, 0, 1, 1], [], []>} : vector<1x32xf32>, vector<32x128xf32>, vector<1x128xf32> -> vector<1x128xf32>
    %95 = arith.addf %93, %94 : vector<1x128xf32>
    %96 = math.tanh %95 : vector<1x128xf32>
    %97 = arith.mulf %96, %14 : vector<1x128xf32>
    %98 = arith.addf %97, %17 : vector<1x128xf32>
    %99 = vector.extract_strided_slice %98 {offsets = [0, 0], sizes = [1, 32], strides = [1, 1]} : vector<1x128xf32> to vector<1x32xf32>
    %100 = vector.extract_strided_slice %98 {offsets = [0, 32], sizes = [1, 32], strides = [1, 1]} : vector<1x128xf32> to vector<1x32xf32>
    %101 = vector.extract_strided_slice %98 {offsets = [0, 64], sizes = [1, 32], strides = [1, 1]} : vector<1x128xf32> to vector<1x32xf32>
    %102 = vector.extract_strided_slice %98 {offsets = [0, 96], sizes = [1, 32], strides = [1, 1]} : vector<1x128xf32> to vector<1x32xf32>
    %103 = arith.mulf %100, %89 : vector<1x32xf32>
    %104 = arith.mulf %99, %101 : vector<1x32xf32>
    %105 = arith.addf %103, %104 : vector<1x32xf32>
    %106 = math.tanh %105 : vector<1x32xf32>
    %107 = arith.mulf %102, %106 : vector<1x32xf32>
    %c4 = arith.constant 4 : index
    %c0_30 = arith.constant 0 : index
    %108 = vector.load %arg7[%c4, %c0_30] : memref<8x32xf32, #tpu.memory_space<vmem>>, vector<1x32xf32>
    tpu.vector_store %arg7[%c4, %c0_30], %107 {strides = array<i32>} : memref<8x32xf32, #tpu.memory_space<vmem>>, vector<1x32xf32>,
    %109 = vector.extract_strided_slice %22 {offsets = [5, 0], sizes = [1, 128], strides = [1, 1]} : vector<8x128xf32> to vector<1x128xf32>
    %cst_31 = arith.constant dense<0.000000e+00> : vector<1x128xf32>
    %110 = tpu.matmul %107, %24, %cst_31 {dimension_numbers = #tpu.dot_dimension_numbers<[1], [0], [0], [1], [0, 0, 1, 1], [], []>} : vector<1x32xf32>, vector<32x128xf32>, vector<1x128xf32> -> vector<1x128xf32>
    %111 = arith.addf %109, %110 : vector<1x128xf32>
    %112 = math.tanh %111 : vector<1x128xf32>
    %113 = arith.mulf %112, %14 : vector<1x128xf32>
    %114 = arith.addf %113, %17 : vector<1x128xf32>
    %115 = vector.extract_strided_slice %114 {offsets = [0, 0], sizes = [1, 32], strides = [1, 1]} : vector<1x128xf32> to vector<1x32xf32>
    %116 = vector.extract_strided_slice %114 {offsets = [0, 32], sizes = [1, 32], strides = [1, 1]} : vector<1x128xf32> to vector<1x32xf32>
    %117 = vector.extract_strided_slice %114 {offsets = [0, 64], sizes = [1, 32], strides = [1, 1]} : vector<1x128xf32> to vector<1x32xf32>
    %118 = vector.extract_strided_slice %114 {offsets = [0, 96], sizes = [1, 32], strides = [1, 1]} : vector<1x128xf32> to vector<1x32xf32>
    %119 = arith.mulf %116, %105 : vector<1x32xf32>
    %120 = arith.mulf %115, %117 : vector<1x32xf32>
    %121 = arith.addf %119, %120 : vector<1x32xf32>
    %122 = math.tanh %121 : vector<1x32xf32>
    %123 = arith.mulf %118, %122 : vector<1x32xf32>
    %c5 = arith.constant 5 : index
    %c0_32 = arith.constant 0 : index
    %124 = vector.load %arg7[%c5, %c0_32] : memref<8x32xf32, #tpu.memory_space<vmem>>, vector<1x32xf32>
    tpu.vector_store %arg7[%c5, %c0_32], %123 {strides = array<i32>} : memref<8x32xf32, #tpu.memory_space<vmem>>, vector<1x32xf32>,
    %125 = vector.extract_strided_slice %22 {offsets = [6, 0], sizes = [1, 128], strides = [1, 1]} : vector<8x128xf32> to vector<1x128xf32>
    %cst_33 = arith.constant dense<0.000000e+00> : vector<1x128xf32>
    %126 = tpu.matmul %123, %24, %cst_33 {dimension_numbers = #tpu.dot_dimension_numbers<[1], [0], [0], [1], [0, 0, 1, 1], [], []>} : vector<1x32xf32>, vector<32x128xf32>, vector<1x128xf32> -> vector<1x128xf32>
    %127 = arith.addf %125, %126 : vector<1x128xf32>
    %128 = math.tanh %127 : vector<1x128xf32>
    %129 = arith.mulf %128, %14 : vector<1x128xf32>
    %130 = arith.addf %129, %17 : vector<1x128xf32>
    %131 = vector.extract_strided_slice %130 {offsets = [0, 0], sizes = [1, 32], strides = [1, 1]} : vector<1x128xf32> to vector<1x32xf32>
    %132 = vector.extract_strided_slice %130 {offsets = [0, 32], sizes = [1, 32], strides = [1, 1]} : vector<1x128xf32> to vector<1x32xf32>
    %133 = vector.extract_strided_slice %130 {offsets = [0, 64], sizes = [1, 32], strides = [1, 1]} : vector<1x128xf32> to vector<1x32xf32>
    %134 = vector.extract_strided_slice %130 {offsets = [0, 96], sizes = [1, 32], strides = [1, 1]} : vector<1x128xf32> to vector<1x32xf32>
    %135 = arith.mulf %132, %121 : vector<1x32xf32>
    %136 = arith.mulf %131, %133 : vector<1x32xf32>
    %137 = arith.addf %135, %136 : vector<1x32xf32>
    %138 = math.tanh %137 : vector<1x32xf32>
    %139 = arith.mulf %134, %138 : vector<1x32xf32>
    %c6 = arith.constant 6 : index
    %c0_34 = arith.constant 0 : index
    %140 = vector.load %arg7[%c6, %c0_34] : memref<8x32xf32, #tpu.memory_space<vmem>>, vector<1x32xf32>
    tpu.vector_store %arg7[%c6, %c0_34], %139 {strides = array<i32>} : memref<8x32xf32, #tpu.memory_space<vmem>>, vector<1x32xf32>,
    %c0_35 = arith.constant 0 : index
    %c0_36 = arith.constant 0 : index
    %141 = vector.load %arg7[%c0_35, %c0_36] : memref<8x32xf32, #tpu.memory_space<vmem>>, vector<8x32xf32>
    %cst_37 = arith.constant dense<0.000000e+00> : vector<8x128xf32>
    %142 = tpu.matmul %141, %4, %cst_37 {dimension_numbers = #tpu.dot_dimension_numbers<[1], [0], [0], [1], [0, 0, 1, 1], [], []>} : vector<8x32xf32>, vector<32x128xf32>, vector<8x128xf32> -> vector<8x128xf32>
    %143 = vector.broadcast %5 : vector<1x128xf32> to vector<8x128xf32>
    %144 = arith.addf %142, %143 : vector<8x128xf32>
    %c0_38 = arith.constant 0 : index
    %c0_39 = arith.constant 0 : index
    %145 = vector.load %arg6[%c0_38, %c0_39] : memref<8x128xf32, #tpu.memory_space<vmem>>, vector<8x128xf32>
    tpu.vector_store %arg6[%c0_38, %c0_39], %144 {strides = array<i32>} : memref<8x128xf32, #tpu.memory_space<vmem>>, vector<8x128xf32>,
    return
  }
}

</mosaic_0001>

<bundles_post_ra>
// kernel: _lstm_net_forward_prepared.1
= control target key start
LH: loop header
LB: loop body
LE: loop exit
PB: predicated region body
PF: predicated region fallthrough
CT: control target
= control target key end

     0   :  { %11 = vsyncpa [#allocation4], 0  ;;  %s1656_s0 = inlined_call_operand.hbm [shape: f32[8,16], index: 0, kind: input, shape index: {}]   ;;  %s1657_s1 = inlined_call_operand.hbm [shape: f32[16,128], index: 1, kind: input, shape index: {}]   ;;  %s1658_s2 = inlined_call_operand.hbm [shape: f32[32,128], index: 2, kind: input, shape index: {}]   ;;  %s1659_s3 = inlined_call_operand.vmem [shape: f32[1,128], index: 3, kind: input, shape index: {}]   ;;  %s1660_s4 = inlined_call_operand.hbm [shape: f32[32,128], index: 4, kind: input, shape index: {}]   ;;  %s1661_s5 = inlined_call_operand.vmem [shape: f32[1,128], index: 5, kind: input, shape index: {}]   ;;  %s1662_s6 = inlined_call_operand.hbm [shape: f32[8,128], index: 6, kind: output, shape index: {}]  }
   0x1   :  { %12 = vsyncpa [#allocation7], 0 }
   0x2   :  { %13 = vsyncpa [#allocation10], 0 }
   0x3   :  { %14 = vsyncpa [#allocation5], 0  ;;  %s1385_s21 = smov [#allocation6]   ;;  %s1267_s25 = scalar_lea.hbm %s1657_s1, 256 }
   0x4   :  { %s30_s22 = sshll.u32 %s1385_s21, 4  ;;  %p1268_p0 = scmp.ne.s32.totalorder %s1657_s1, %s1267_s25  ;;  %s31_s22 = int_to_ptr.vmem [resolvable:$true] %s30_s22 }
   0x5   :  { %p1271_p1 = scmp.lt.u32.totalorder %s1267_s25, %s1657_s1 }
   0x7   :  { %p1273_p2 = pnand %p1271_p1, %p1268_p0 }
   0x9   :  { %1276 = shalt.err (!%p1273_p2)
}
   0xa   :  { %s1277_s30 = scalar_lea.vmem %s31_s22, 256  ;;  %p1282_p4 = scmp.lt.s32.totalorder %s31_s22, %s31_s22 }
   0xb   :  { %p1278_p3 = scmp.ne.s32.totalorder %s31_s22, %s1277_s30  ;;  %p1283_p5 = scmp.lt.s32.totalorder %s1277_s30, %s1277_s30 }
   0xd   :  { %p1284_p6 = por %p1283_p5, %p1282_p4 }
   0xf   :  { %p1285_p7 = pnand %p1284_p6, %p1278_p3 }
  0x11   :  { %1288 = shalt.err (!%p1285_p7)
}
  0x12   :  { %s1386_s7 = smov 128   ;;  %s1387_s8 = smov 8  }
  0x13   :  { %36 = dma.hbm_to_vmem [thread:$0]  %s1657_s1, 256, %s31_s22, [#allocation7], %s1386_s7, %s1386_s7, %s1387_s8  }
  0x14   :  { %s1388_s11 = smov [#allocation3]   ;;  %s1389_s13 = smov [#allocation8]  }
  0x15   :  { %s21_s12 = sshll.u32 %s1388_s11, 4  ;;  %s42_s14 = sshll.u32 %s1389_s13, 4  ;;  %s22_s12 = int_to_ptr.vmem [resolvable:$true] %s21_s12  ;;  %s43_s14 = int_to_ptr.vmem [resolvable:$true] %s42_s14 }
  0x16   :  { %s1289_s17 = scalar_lea.hbm %s1656_s0, 128 }
  0x17   :  { %p1290_p8 = scmp.ne.s32.totalorder %s1656_s0, %s1289_s17  ;;  %p1293_p9 = scmp.lt.u32.totalorder %s1289_s17, %s1656_s0 }
  0x19   :  { %p1295_p10 = pnand %p1293_p9, %p1290_p8 }
  0x1b   :  { %1298 = shalt.err (!%p1295_p10)
}
  0x1c   :  { %s1299_s1 = scalar_lea.vmem %s22_s12, 128  ;;  %p1304_p12 = scmp.lt.s32.totalorder %s22_s12, %s22_s12 }
  0x1d   :  { %p1300_p11 = scmp.ne.s32.totalorder %s22_s12, %s1299_s1  ;;  %p1305_p13 = scmp.lt.s32.totalorder %s1299_s1, %s1299_s1 }
  0x1f   :  { %p1306_p0 = por %p1305_p13, %p1304_p12 }
  0x21   :  { %p1307_p1 = pnand %p1306_p0, %p1300_p11 }
  0x23   :  { %1310 = shalt.err (!%p1307_p1)
}
  0x24   :  { %24 = dma.hbm_to_vmem [thread:$0]  %s1656_s0, 128, %s22_s12, [#allocation4]  }
  0x25   :  { %s1311_s26 = scalar_lea.hbm %s1658_s2, 512 }
  0x26   :  { %p1312_p2 = scmp.ne.s32.totalorder %s1658_s2, %s1311_s26  ;;  %p1315_p3 = scmp.lt.u32.totalorder %s1311_s26, %s1658_s2 }
  0x28   :  { %p1317_p4 = pnand %p1315_p3, %p1312_p2 }
  0x2a   :  { %1320 = shalt.err (!%p1317_p4)
}
  0x2b   :  { %s1321_s9 = scalar_lea.vmem %s43_s14, 512  ;;  %p1326_p6 = scmp.lt.s32.totalorder %s43_s14, %s43_s14 }
  0x2c   :  { %p1322_p5 = scmp.ne.s32.totalorder %s43_s14, %s1321_s9  ;;  %p1327_p7 = scmp.lt.s32.totalorder %s1321_s9, %s1321_s9 }
  0x2e   :  { %p1328_p8 = por %p1327_p7, %p1326_p6 }
  0x30   :  { %p1329_p9 = pnand %p1328_p8, %p1322_p5 }
  0x32   :  { %1332 = shalt.err (!%p1329_p9)
}
  0x33   :  { %48 = dma.hbm_to_vmem [thread:$0]  %s1658_s2, 512, %s43_s14, [#allocation7], %s1386_s7, %s1386_s7, %s1387_s8  }
  0x34   :  { %s1390_s11 = smov [#allocation9]   ;;  %s1333_s16 = scalar_lea.hbm %s1660_s4, 512 }
  0x35   :  { %s56_s12 = sshll.u32 %s1390_s11, 4  ;;  %p1334_p10 = scmp.ne.s32.totalorder %s1660_s4, %s1333_s16  ;;  %s57_s12 = int_to_ptr.vmem [resolvable:$true] %s56_s12 }
  0x36   :  { %p1337_p11 = scmp.lt.u32.totalorder %s1333_s16, %s1660_s4 }
  0x38   :  { %p1339_p12 = pnand %p1337_p11, %p1334_p10 }
  0x3a   :  { %1342 = shalt.err (!%p1339_p12)
}
  0x3b   :  { %s1343_s21 = scalar_lea.vmem %s57_s12, 512  ;;  %p1348_p0 = scmp.lt.s32.totalorder %s57_s12, %s57_s12 }
  0x3c   :  { %p1344_p13 = scmp.ne.s32.totalorder %s57_s12, %s1343_s21  ;;  %p1349_p1 = scmp.lt.s32.totalorder %s1343_s21, %s1343_s21 }
  0x3e   :  { %p1350_p2 = por %p1349_p1, %p1348_p0 }
  0x40   :  { %p1351_p3 = pnand %p1350_p2, %p1344_p13 }
  0x42   :  { %1354 = shalt.err (!%p1351_p3)
}
  0x43   :  { %62 = dma.hbm_to_vmem [thread:$0]  %s1660_s4, 512, %s57_s12, [#allocation10], %s1386_s7, %s1386_s7, %s1387_s8  }
  0x44   :  { %1377 = dma.done.wait [#allocation4], 128  }
  0x45   :  { %1378 = vsyncadd [#allocation4], 4294967168 }
  0x46   :  { %1379 = dma.done.wait [#allocation7], 768  }
  0x47   :  { %1380 = vsyncadd [#allocation7], 4294966528 }
  0x48   :  { %1381 = dma.done.wait [#allocation10], 512  }
  0x49   :  { %1382 = vsyncadd [#allocation10], 4294966784  ;;  %v90_v0 = vlaneseq  ;;  %v1391_v1 = vmov 0.0|0.0   ;;  %vm1392_vm0 = vmmov 0   ;;  %v1393_v3 = vmov 0.0   ;;  %v78_v7 = vld [vmem:[#allocation6] sm:$0xff] }
  0x4a   :  { %1175 = vmatprep.subr.bf16.mxu0 %v1391_v1  ;;  %1178 = vmatprep.subr.bf16.mxu1 %v1391_v1  ;;  %v1394_v5 = vmov 0.5   ;;  %v79_v8 = vld [vmem:[#allocation6 + $0x8] sm:$0xff]  ;;  %v80_v9 = vld [vmem:[#allocation8] sm:$0xff]  ;;  %v81_v11 = vld [vmem:[#allocation8 + $0x8] sm:$0xff]  ;;  %vm103_vm4 = vcmask 130048   ;;  %s1396_s8 = smov 32  }
  0x4b   :  { %v91_v2 = vand.u32 127, %v90_v0  ;;  %1084 = vmatprep.mubr.msk.f32.mxu0 %vm1392_vm0, %v1393_v3  ;;  %1095 = vmatprep.mubr.msk.f32.mxu1 %vm1392_vm0, %v1393_v3  ;;  %v1176_v10 = vpack.c.bf16 %v79_v8, %v78_v7  ;;  %v82_v13 = vld [vmem:[#allocation8 + $0x10] sm:$0xff]  ;;  %v83_v15 = vld [vmem:[#allocation8 + $0x18] sm:$0xff]  ;;  %v77_v17 = vld [vmem:[#allocation3] sm:$0xff]  ;;  %vm182_vm5 = vcmask 261120   ;;  %vm282_vm6 = vcmask 253952  }
  0x4c   :  { %v1027_v21 = vld [vmem:[%s1659_s3] ss:$0 sm:$0xff]  ;;  %s1395_s3 = smov 64   ;;  %183 = vst.msk [vmem:[#allocation2] sm:$0xff] %vm182_vm5, %v1393_v3  ;;  %vm387_vm7 = vcmask 254977   ;;  %vm603_vm8 = vcmask 257027  }
  0x4d   :  { %vm92_vm1 = vcmp.ge.s32.totalorder %v91_v2, 64  ;;  %vm93_vm2 = vcmp.lt.s32.totalorder %v91_v2, 96  ;;  %1177 = vmatpush3.bf16.msra.mxu0 %v1176_v10  ;;  %vm819_vm9 = vcmask 259077   ;;  %vm495_vm10 = vcmask 256002   ;;  %s1397_s23 = smov [#allocation11]  }
  0x4e   :  { %vm1496_vm3 = vmand %vm92_vm1, %vm93_vm2  ;;  %1184 = vmatprep.subr.bf16.mxu0 %v1391_v1  ;;  %vm711_vm11 = vcmask 258052   ;;  %vm927_vm12 = vcmask 260102   ;;  %s1016_s24 = sshll.u32 %s1397_s23, 4  ;;  %s1017_s24 = int_to_ptr.vmem [resolvable:$true] %s1016_s24 }
  0x4f   :  { %v1502_v6 = vsel %vm1496_vm3, 1.0, %v1394_v5  ;;  %v1539_v30 = vsel %vm1496_vm3, 0.0, %v1394_v5  ;;  %s1355_s25 = scalar_lea.vmem %s1017_s24, 128  ;;  %p1360_p5 = scmp.lt.s32.totalorder %s1017_s24, %s1017_s24 }
  0x50   :  { %v178_v12 = vmul.f32 %v1502_v6, %v80_v9  ;;  %v179_v14 = vmul.f32 %v1502_v6, %v81_v11  ;;  %v180_v16 = vmul.f32 %v1502_v6, %v82_v13  ;;  %v181_v18 = vmul.f32 %v1502_v6, %v83_v15  ;;  %1085 = vmatmul.mubr.msk.f32.vlgmr.msra.gmra.mrb[0].mxu0 %vm103_vm4, %v77_v17  ;;  %p1356_p4 = scmp.ne.s32.totalorder %s1017_s24, %s1355_s25  ;;  %p1361_p6 = scmp.lt.s32.totalorder %s1355_s25, %s1355_s25 }
  0x51   :  { %1106 = vmatprep.mubr.msk.f32.mxu0 %vm1392_vm0, %v1393_v3 }
  0x52   :  { %v1508_v19 = vpack.c.bf16 %v179_v14, %v178_v12  ;;  %v1512_v20 = vpack.c.bf16 %v181_v18, %v180_v16  ;;  %p1362_p7 = por %p1361_p6, %p1360_p5 }
  0x54   :  { %1180 = vmatpush3.bf16.msra.mxu1 %v1508_v19  ;;  %1186 = vmatpush3.bf16.msra.mxu0 %v1508_v19  ;;  %p1363_p8 = pnand %p1362_p7, %p1356_p4 }
  0x55   :  { %1181 = vmatprep.subr.bf16.mxu1 %v1391_v1  ;;  %1187 = vmatprep.subr.bf16.mxu0 %v1391_v1 }
  0x58   :  { %1183 = vmatpush3.bf16.msra.mxu1 %v1512_v20  ;;  %1189 = vmatpush3.bf16.msra.mxu0 %v1512_v20 }
  0x59   :  { %1190 = vmatprep.subr.bf16.mxu1 %v1391_v1  ;;  %1196 = vmatprep.subr.bf16.mxu0 %v1391_v1 }
  0x5b   :  { %1096 = vmatmul.mubr.f32.vlgmr.msra.gmra.mrb[0].mxu1 %v1393_v3 }
  0x5c   :  { %1192 = vmatpush3.bf16.msra.mxu1 %v1508_v19  ;;  %1117 = vmatprep.mubr.msk.f32.mxu1 %vm1392_vm0, %v1393_v3 }
  0x5d   :  { %1193 = vmatprep.subr.bf16.mxu1 %v1391_v1 }
  0x60   :  { %1195 = vmatpush3.bf16.msra.mxu1 %v1512_v20 }
  0x61   :  { %1202 = vmatprep.subr.bf16.mxu1 %v1391_v1 }
 0x123   :  { %v173_v22 = vpop.f32.mrb[0].mxu0 }
 0x124   :  { %v174_v23 = vadd.f32 %v1027_v21, %v173_v22  ;;  %v1086_v24 = vpop.f32.mrb[1].mxu0 }
 0x126   :  { %v1534_v25 = vmul.f32 %v174_v23, %v1502_v6 }
 0x12e   :  { %v253_v26 = vpop.f32.mrb[0].mxu1 }
 0x12f   :  { %v257_v27 = vadd.f32 %v253_v26, %v1534_v25  ;;  %v1097_v28 = vpop.f32.mrb[1].mxu1 }
 0x131   :  { %1239 = vtanh.f32 %v257_v27 }
 0x13b   :  { %v1240_v29 = vpop.eup %1239 }
 0x13c   :  { %v259_v31 = vmul.f32 %v1240_v29, %v1502_v6 }
 0x13e   :  { %v260_v32 = vadd.f32 %v259_v31, %v1539_v30 }
 0x140   :  { %263 = vrot.lane.b32.xlu0 %v260_v32, %s1395_s3  ;;  %v261_v35 = vmul.f32 0.0, %v260_v32 }
 0x1b2   :  { %v264_v33 = vpop.permute.xlu0 %263 }
 0x1b3   :  { %v266_v34 = vmul.f32 %v264_v33, %v260_v32 }
 0x1b5   :  { %268 = vrot.lane.b32.xlu0 %v266_v34, %s1396_s8 }
 0x227   :  { %v269_v36 = vpop.permute.xlu0 %268 }
 0x228   :  { %v271_v37 = vadd.f32 %v269_v36, %v261_v35 }
 0x22a   :  { %1241 = vtanh.f32 %v271_v37  ;;  %v364_v51 = vrot.slane %v271_v37, 7 }
 0x234   :  { %v1242_v38 = vpop.eup %1241 }
 0x235   :  { %274 = vrot.lane.b32.xlu1 %v1242_v38, %s1395_s3 }
 0x2a7   :  { %v275_v39 = vpop.permute.xlu1 %274 }
 0x2a8   :  { %v277_v40 = vmul.f32 %v275_v39, %v260_v32 }
 0x2aa   :  { %279 = vrot.lane.b32.xlu1 %v277_v40, %s1396_s8 }
 0x31c   :  { %v280_v41 = vpop.permute.xlu1 %279 }
 0x31d   :  { %283 = vst.msk [vmem:[#allocation2] sm:$0x1] %vm282_vm6, %v280_v41  ;;  %1107 = vmatmul.mubr.msk.f32.vlgmr.msra.gmra.mrb[2].mxu0 %vm182_vm5, %v280_v41 }
 0x31e   :  { %1198 = vmatpush3.bf16.msra.mxu0 %v1508_v19  ;;  %1128 = vmatprep.mubr.msk.f32.mxu0 %vm1392_vm0, %v1393_v3 }
 0x31f   :  { %1199 = vmatprep.subr.bf16.mxu0 %v1391_v1 }
 0x322   :  { %1201 = vmatpush3.bf16.msra.mxu0 %v1512_v20 }
 0x323   :  { %1208 = vmatprep.subr.bf16.mxu0 %v1391_v1 }
 0x3f0   :  { %v352_v42 = vpop.f32.mrb[2].mxu0 }
 0x3f1   :  { %v357_v43 = vrot.slane %v352_v42, 7  ;;  %v1108_v44 = vpop.f32.mrb[3].mxu0 }
 0x3f3   :  { %v359_v45 = vadd.f32 %v357_v43, %v1534_v25 }
 0x3f5   :  { %1243 = vtanh.f32 %v359_v45 }
 0x3ff   :  { %v1244_v46 = vpop.eup %1243 }
 0x400   :  { %v361_v47 = vmul.f32 %v1244_v46, %v1502_v6 }
 0x402   :  { %v362_v48 = vadd.f32 %v361_v47, %v1539_v30 }
 0x404   :  { %368 = vrot.lane.b32.xlu0 %v362_v48, %s1395_s3  ;;  %v366_v52 = vmul.f32 %v364_v51, %v362_v48 }
 0x476   :  { %v369_v49 = vpop.permute.xlu0 %368 }
 0x477   :  { %v371_v50 = vmul.f32 %v369_v49, %v362_v48 }
 0x479   :  { %373 = vrot.lane.b32.xlu1 %v371_v50, %s1396_s8 }
 0x4eb   :  { %v374_v53 = vpop.permute.xlu1 %373 }
 0x4ec   :  { %v376_v54 = vadd.f32 %v374_v53, %v366_v52 }
 0x4ee   :  { %1245 = vtanh.f32 %v376_v54  ;;  %v472_v8 = vrot.slane %v376_v54, 7 }
 0x4f8   :  { %v1246_v55 = vpop.eup %1245 }
 0x4f9   :  { %379 = vrot.lane.b32.xlu0 %v1246_v55, %s1395_s3 }
 0x56b   :  { %v380_v56 = vpop.permute.xlu0 %379 }
 0x56c   :  { %v1562_v57 = vmul.f32 %v380_v56, %v362_v48 }
 0x56e   :  { %v389_v58 = vrot.slane %v1562_v57, 1 }
 0x570   :  { %390 = vrot.lane.b32.xlu1 %v389_v58, %s1396_s8 }
 0x5e2   :  { %v391_v59 = vpop.permute.xlu1 %390 }
 0x5e3   :  { %1118 = vmatmul.mubr.msk.f32.vlgmr.msra.gmra.mrb[2].mxu1 %vm182_vm5, %v391_v59 }
 0x5e4   :  { %1204 = vmatpush3.bf16.msra.mxu1 %v1508_v19  ;;  %1139 = vmatprep.mubr.msk.f32.mxu1 %vm1392_vm0, %v1393_v3 }
 0x5e5   :  { %1205 = vmatprep.subr.bf16.mxu1 %v1391_v1 }
 0x5e8   :  { %1207 = vmatpush3.bf16.msra.mxu1 %v1512_v20 }
 0x5e9   :  { %1214 = vmatprep.subr.bf16.mxu1 %v1391_v1 }
 0x6b6   :  { %v460_v60 = vpop.f32.mrb[2].mxu1 }
 0x6b7   :  { %v465_v61 = vrot.slane %v460_v60, 6  ;;  %v1119_v62 = vpop.f32.mrb[3].mxu1 }
 0x6b9   :  { %v467_v63 = vadd.f32 %v465_v61, %v1534_v25 }
 0x6bb   :  { %1247 = vtanh.f32 %v467_v63 }
 0x6c5   :  { %v1248_v0 = vpop.eup %1247 }
 0x6c6   :  { %v469_v2 = vmul.f32 %v1248_v0, %v1502_v6 }
 0x6c8   :  { %v470_v4 = vadd.f32 %v469_v2, %v1539_v30 }
 0x6ca   :  { %476 = vrot.lane.b32.xlu0 %v470_v4, %s1395_s3  ;;  %v474_v9 = vmul.f32 %v472_v8, %v470_v4 }
 0x73c   :  { %v477_v5 = vpop.permute.xlu0 %476 }
 0x73d   :  { %v479_v7 = vmul.f32 %v477_v5, %v470_v4 }
 0x73f   :  { %481 = vrot.lane.b32.xlu1 %v479_v7, %s1396_s8 }
 0x7b1   :  { %v482_v10 = vpop.permute.xlu1 %481 }
 0x7b2   :  { %v484_v11 = vadd.f32 %v482_v10, %v474_v9 }
 0x7b4   :  { %1249 = vtanh.f32 %v484_v11  ;;  %v580_v29 = vrot.slane %v484_v11, 7 }
 0x7be   :  { %v1250_v12 = vpop.eup %1249 }
 0x7bf   :  { %487 = vrot.lane.b32.xlu0 %v1250_v12, %s1395_s3 }
 0x831   :  { %v488_v13 = vpop.permute.xlu0 %487 }
 0x832   :  { %v1579_v14 = vmul.f32 %v488_v13, %v470_v4 }
 0x834   :  { %v497_v15 = vrot.slane %v1579_v14, 2 }
 0x836   :  { %498 = vrot.lane.b32.xlu1 %v497_v15, %s1396_s8 }
 0x8a8   :  { %v499_v16 = vpop.permute.xlu1 %498 }
 0x8a9   :  { %1129 = vmatmul.mubr.msk.f32.vlgmr.msra.gmra.mrb[4].mxu0 %vm182_vm5, %v499_v16 }
 0x8aa   :  { %1210 = vmatpush3.bf16.msra.mxu0 %v1508_v19  ;;  %1150 = vmatprep.mubr.msk.f32.mxu0 %vm1392_vm0, %v1393_v3 }
 0x8ab   :  { %1211 = vmatprep.subr.bf16.mxu0 %v1391_v1 }
 0x8ae   :  { %1213 = vmatpush3.bf16.msra.mxu0 %v1512_v20 }
 0x8af   :  { %1220 = vmatprep.subr.bf16.mxu0 %v1391_v1 }
 0x97c   :  { %v568_v17 = vpop.f32.mrb[4].mxu0 }
 0x97d   :  { %v573_v18 = vrot.slane %v568_v17, 5  ;;  %v1130_v21 = vpop.f32.mrb[5].mxu0 }
 0x97f   :  { %v575_v22 = vadd.f32 %v573_v18, %v1534_v25 }
 0x981   :  { %1251 = vtanh.f32 %v575_v22 }
 0x98b   :  { %v1252_v23 = vpop.eup %1251 }
 0x98c   :  { %v577_v24 = vmul.f32 %v1252_v23, %v1502_v6 }
 0x98e   :  { %v578_v26 = vadd.f32 %v577_v24, %v1539_v30 }
 0x990   :  { %584 = vrot.lane.b32.xlu0 %v578_v26, %s1395_s3  ;;  %v582_v31 = vmul.f32 %v580_v29, %v578_v26 }
 0xa02   :  { %v585_v27 = vpop.permute.xlu0 %584 }
 0xa03   :  { %v587_v28 = vmul.f32 %v585_v27, %v578_v26 }
 0xa05   :  { %589 = vrot.lane.b32.xlu1 %v587_v28, %s1396_s8 }
 0xa77   :  { %v590_v32 = vpop.permute.xlu1 %589 }
 0xa78   :  { %v592_v33 = vadd.f32 %v590_v32, %v582_v31  ;;  %v86_v31 = vld [vmem:[#allocation9 + $0x8] sm:$0xff] }
 0xa7a   :  { %1253 = vtanh.f32 %v592_v33  ;;  %v688_v47 = vrot.slane %v592_v33, 7  ;;  %v87_v33 = vld [vmem:[#allocation9 + $0x10] sm:$0xff] }
 0xa84   :  { %v1254_v34 = vpop.eup %1253 }
 0xa85   :  { %595 = vrot.lane.b32.xlu0 %v1254_v34, %s1395_s3  ;;  %v88_v34 = vld [vmem:[#allocation9 + $0x18] sm:$0xff] }
 0xaf7   :  { %v596_v35 = vpop.permute.xlu0 %595 }
 0xaf8   :  { %v1596_v36 = vmul.f32 %v596_v35, %v578_v26  ;;  %v1224_v35 = vpack.c.bf16 %v88_v34, %v87_v33 }
 0xafa   :  { %v605_v37 = vrot.slane %v1596_v36, 3 }
 0xafc   :  { %606 = vrot.lane.b32.xlu1 %v605_v37, %s1396_s8 }
 0xb6e   :  { %v607_v38 = vpop.permute.xlu1 %606 }
 0xb6f   :  { %1140 = vmatmul.mubr.msk.f32.vlgmr.msra.gmra.mrb[4].mxu1 %vm182_vm5, %v607_v38 }
 0xb70   :  { %1216 = vmatpush3.bf16.msra.mxu1 %v1508_v19  ;;  %1161 = vmatprep.mubr.msk.f32.mxu1 %vm1392_vm0, %v1393_v3 }
 0xb71   :  { %1217 = vmatprep.subr.bf16.mxu1 %v1391_v1 }
 0xb74   :  { %1219 = vmatpush3.bf16.msra.mxu1 %v1512_v20 }
 0xc42   :  { %v676_v39 = vpop.f32.mrb[4].mxu1 }
 0xc43   :  { %v681_v40 = vrot.slane %v676_v39, 4  ;;  %v1141_v41 = vpop.f32.mrb[5].mxu1 }
 0xc45   :  { %v683_v42 = vadd.f32 %v681_v40, %v1534_v25 }
 0xc47   :  { %1255 = vtanh.f32 %v683_v42 }
 0xc51   :  { %v1256_v43 = vpop.eup %1255 }
 0xc52   :  { %v685_v44 = vmul.f32 %v1256_v43, %v1502_v6 }
 0xc54   :  { %v686_v45 = vadd.f32 %v685_v44, %v1539_v30 }
 0xc56   :  { %692 = vrot.lane.b32.xlu0 %v686_v45, %s1395_s3  ;;  %v690_v48 = vmul.f32 %v688_v47, %v686_v45 }
 0xcc8   :  { %v693_v19 = vpop.permute.xlu0 %692 }
 0xcc9   :  { %v695_v46 = vmul.f32 %v693_v19, %v686_v45 }
 0xccb   :  { %697 = vrot.lane.b32.xlu1 %v695_v46, %s1396_s8 }
 0xd3d   :  { %v698_v20 = vpop.permute.xlu1 %697 }
 0xd3e   :  { %v700_v49 = vadd.f32 %v698_v20, %v690_v48 }
 0xd40   :  { %1257 = vtanh.f32 %v700_v49  ;;  %v796_v2 = vrot.slane %v700_v49, 7 }
 0xd4a   :  { %v1258_v50 = vpop.eup %1257 }
 0xd4b   :  { %703 = vrot.lane.b32.xlu0 %v1258_v50, %s1395_s3 }
 0xdbd   :  { %v704_v51 = vpop.permute.xlu0 %703 }
 0xdbe   :  { %v706_v52 = vmul.f32 %v704_v51, %v686_v45 }
 0xdc0   :  { %v713_v53 = vrot.slane %v706_v52, 4 }
 0xdc2   :  { %714 = vrot.lane.b32.xlu1 %v713_v53, %s1396_s8 }
 0xe34   :  { %v715_v54 = vpop.permute.xlu1 %714 }
 0xe35   :  { %1151 = vmatmul.mubr.msk.f32.vlgmr.msra.gmra.mrb[6].mxu0 %vm182_vm5, %v715_v54 }
 0xe36   :  { %1172 = vmatprep.mubr.msk.f32.mxu0 %vm1392_vm0, %v1393_v3 }
 0xf08   :  { %v784_v55 = vpop.f32.mrb[6].mxu0 }
 0xf09   :  { %v789_v56 = vrot.slane %v784_v55, 3  ;;  %v1152_v58 = vpop.f32.mrb[7].mxu0 }
 0xf0b   :  { %v791_v59 = vadd.f32 %v789_v56, %v1534_v25 }
 0xf0d   :  { %1259 = vtanh.f32 %v791_v59 }
 0xf17   :  { %v1260_v60 = vpop.eup %1259 }
 0xf18   :  { %v793_v61 = vmul.f32 %v1260_v60, %v1502_v6 }
 0xf1a   :  { %v794_v62 = vadd.f32 %v793_v61, %v1539_v30 }
 0xf1c   :  { %800 = vrot.lane.b32.xlu0 %v794_v62, %s1395_s3  ;;  %v798_v4 = vmul.f32 %v796_v2, %v794_v62 }
 0xf8e   :  { %v801_v63 = vpop.permute.xlu0 %800 }
 0xf8f   :  { %v803_v0 = vmul.f32 %v801_v63, %v794_v62 }
 0xf91   :  { %805 = vrot.lane.b32.xlu1 %v803_v0, %s1396_s8 }
0x1003   :  { %v806_v3 = vpop.permute.xlu1 %805 }
0x1004   :  { %v808_v5 = vadd.f32 %v806_v3, %v798_v4 }
0x1006   :  { %1261 = vtanh.f32 %v808_v5 }
0x1010   :  { %v1262_v7 = vpop.eup %1261 }
0x1011   :  { %811 = vrot.lane.b32.xlu0 %v1262_v7, %s1395_s3 }
0x1083   :  { %v812_v8 = vpop.permute.xlu0 %811 }
0x1084   :  { %v814_v9 = vmul.f32 %v812_v8, %v794_v62 }
0x1086   :  { %v821_v10 = vrot.slane %v814_v9, 5 }
0x1088   :  { %822 = vrot.lane.b32.xlu1 %v821_v10, %s1396_s8 }
0x10fa   :  { %v823_v11 = vpop.permute.xlu1 %822 }
0x10fb   :  { %1162 = vmatmul.mubr.msk.f32.vlgmr.msra.gmra.mrb[6].mxu1 %vm182_vm5, %v823_v11 }
0x11ce   :  { %v892_v12 = vpop.f32.mrb[6].mxu1 }
0x11cf   :  { %v897_v13 = vrot.slane %v892_v12, 2  ;;  %v1163_v15 = vpop.f32.mrb[7].mxu1 }
0x11d1   :  { %v899_v16 = vadd.f32 %v897_v13, %v1534_v25  ;;  %v904_v25 = vrot.slane %v808_v5, 7 }
0x11d3   :  { %1263 = vtanh.f32 %v899_v16 }
0x11dd   :  { %v1264_v17 = vpop.eup %1263 }
0x11de   :  { %v901_v18 = vmul.f32 %v1264_v17, %v1502_v6 }
0x11e0   :  { %v902_v21 = vadd.f32 %v901_v18, %v1539_v30 }
0x11e2   :  { %908 = vrot.lane.b32.xlu0 %v902_v21, %s1395_s3  ;;  %v906_v24 = vmul.f32 %v904_v25, %v902_v21 }
0x1254   :  { %v909_v22 = vpop.permute.xlu0 %908 }
0x1255   :  { %v911_v23 = vmul.f32 %v909_v22, %v902_v21 }
0x1257   :  { %913 = vrot.lane.b32.xlu1 %v911_v23, %s1396_s8 }
0x125b   :  { %384 = vrot.lane.b32.xlu1 %v1562_v57, %s1396_s8  ;;  %v85_v57 = vld [vmem:[#allocation9] sm:$0xff] }
0x125c   :  { %v1221_v32 = vpack.c.bf16 %v86_v31, %v85_v57 }
0x125e   :  { %1222 = vmatpush3.bf16.msra.mxu0 %v1221_v32 }
0x125f   :  { %600 = vrot.lane.b32.xlu1 %v1596_v36, %s1396_s8  ;;  %1223 = vmatprep.subr.bf16.mxu0 %v1391_v1  ;;  %v1035_v1 = vld [vmem:[%s1661_s5] ss:$0 sm:$0xff] }
0x1262   :  { %1225 = vmatpush3.bf16.msra.mxu0 %v1224_v35 }
0x1263   :  { %816 = vrot.lane.b32.xlu1 %v814_v9, %s1396_s8 }
0x12c9   :  { %v914_v26 = vpop.permute.xlu1 %913 }
0x12ca   :  { %v916_v6 = vadd.f32 %v914_v26, %v906_v24 }
0x12cc   :  { %1265 = vtanh.f32 %v916_v6 }
0x12cd   :  { %v385_v30 = vpop.permute.xlu1 %384 }
0x12ce   :  { %388 = vst.msk [vmem:[#allocation2] sm:$0x2] %vm387_vm7, %v385_v30 }
0x12d1   :  { %v601_v27 = vpop.permute.xlu1 %600 }
0x12d2   :  { %604 = vst.msk [vmem:[#allocation2] sm:$0x8] %vm603_vm8, %v601_v27 }
0x12d5   :  { %v817_v28 = vpop.permute.xlu1 %816 }
0x12d6   :  { %v1266_v29 = vpop.eup %1265  ;;  %820 = vst.msk [vmem:[#allocation2] sm:$0x20] %vm819_vm9, %v817_v28 }
0x12d7   :  { %919 = vrot.lane.b32.xlu0 %v1266_v29, %s1395_s3 }
0x12db   :  { %492 = vrot.lane.b32.xlu0 %v1579_v14, %s1396_s8 }
0x12df   :  { %708 = vrot.lane.b32.xlu0 %v706_v52, %s1396_s8 }
0x1349   :  { %v920_v36 = vpop.permute.xlu0 %919 }
0x134a   :  { %v922_v37 = vmul.f32 %v920_v36, %v902_v21 }
0x134c   :  { %924 = vrot.lane.b32.xlu0 %v922_v37, %s1396_s8 }
0x134d   :  { %v493_v38 = vpop.permute.xlu0 %492 }
0x134e   :  { %496 = vst.msk [vmem:[#allocation2] sm:$0x4] %vm495_vm10, %v493_v38 }
0x1351   :  { %v709_v14 = vpop.permute.xlu0 %708 }
0x1352   :  { %712 = vst.msk [vmem:[#allocation2] sm:$0x10] %vm711_vm11, %v709_v14 }
0x13be   :  { %v925_v39 = vpop.permute.xlu0 %924 }
0x13bf   :  { %928 = vst.msk [vmem:[#allocation2] sm:$0x40] %vm927_vm12, %v925_v39 }
0x13c6   :  { %v929_v40 = vld [vmem:[#allocation2] sm:$0xff] }
0x13c7   :  { %1173 = vmatmul.mubr.msk.f32.vlgmr.msra.gmra.mrb[8].mxu0 %vm182_vm5, %v929_v40 }
0x149a   :  { %v1005_v41 = vpop.f32.mrb[8].mxu0 }
0x149b   :  { %v1006_v42 = vadd.f32 %v1035_v1, %v1005_v41  ;;  %v1174_v43 = vpop.f32.mrb[9].mxu0 }
0x149d   :  { %1009 = vst [vmem:[#allocation11] sm:$0xff] %v1006_v42 }
0x149e   :  { %1366 = shalt.err (!%p1363_p8)
}
0x149f   :  { %s1367_s28 = scalar_lea.hbm %s1662_s6, 128 }
0x14a0   :  { %p1368_p9 = scmp.ne.s32.totalorder %s1662_s6, %s1367_s28  ;;  %p1371_p10 = scmp.lt.u32.totalorder %s1367_s28, %s1662_s6 }
0x14a2   :  { %p1373_p11 = pnand %p1371_p10, %p1368_p9 }
0x14a4   :  { %1376 = shalt.err (!%p1373_p11)
}
0x14a5   :  { %1019 = dma.vmem_to_hbm [thread:$0]  %s1017_s24, 128, %s1662_s6, [#allocation5]  }
0x14a6   :  { %1383 = dma.done.wait [#allocation5], 128  }
0x14a7   :  { %1384 = vsyncadd [#allocation5], 4294967168 }
0x14a8   :  { %1023 = vsyncpa [#allocation4], 1 }
0x14a9   :  { %1024 = vsyncpa [#allocation7], 1 }
0x14aa   :  { %1025 = vsyncpa [#allocation10], 1 }
0x14ab   :  { %1026 = vsyncpa [#allocation5], 1 }

</bundles_post_ra>
